<compile_context>
chip_gen: v6e
topology: v6e:2x2x1
jax: 0.10.0
libtpu: 0.0.40
codegen_flags: <defaults>
</compile_context>

<pallas_src>
import functools

import jax
import jax.numpy as jnp
from jax.experimental import pallas as pl
from jax.experimental.pallas import tpu as pltpu


def _round_up(v: int, m: int) -> int:
    return (v + m - 1) // m * m


@functools.lru_cache(maxsize=1)
def _vmem_limit_bytes() -> int:
    """Scoped VMEM limit with headroom; falls back to 64 MiB if undetectable."""
    try:
        cap = int(pltpu.get_tpu_info().vmem_capacity_bytes)
        return max(32 * 1024 * 1024, (cap * 3) // 4)
    except Exception:
        return 64 * 1024 * 1024


def _pick_row_tile(tm, n, dmp, dop, compute_itemsize, out_itemsize, row_align):
    """Largest row tile <= tm that (a) is row_align-aligned and (b) keeps the
    double-buffered tiles + resident weights under the VMEM budget."""
    budget = int(_vmem_limit_bytes() * 0.85)
    resident = 2 * (dmp * dmp + dmp * dop) * compute_itemsize + 2 * (dmp + dop) * 4
    tm_eff = max(row_align, min(tm, _round_up(n, row_align)))
    tm_eff = _round_up(tm_eff, row_align)
    while tm_eff > row_align:
        per_tile = 2 * tm_eff * dmp * compute_itemsize + 2 * tm_eff * dop * out_itemsize
        # f32 intermediates (h, out) live in vregs/VMEM scratch; rough headroom.
        scratch = tm_eff * (dmp + dop) * 4
        if resident + per_tile + scratch <= budget:
            break
        tm_eff = _round_up(max(row_align, tm_eff // 2), row_align)
    return tm_eff


def _mlp_kernel(x_ref, w1_ref, b1_ref, w2_ref, b2_ref, o_ref):
    # x_ref: (tm, dmp)            compute dtype (bf16 or f32)
    # w1_ref: (dmp, dmp), b1_ref: (1, dmp) f32
    # w2_ref: (dmp, dop), b2_ref: (1, dop) f32
    # o_ref:  (tm, dop)           output dtype
    x = x_ref[...]
    # First matmul on the MXU with f32 accumulation; bias added in f32.
    h = jnp.dot(x, w1_ref[...], preferred_element_type=jnp.float32) + b1_ref[...]
    # Exact (erf-based) GELU, matching torch.nn.GELU() default, in f32.
    h = 0.5 * h * (1.0 + jax.lax.erf(h * 0.7071067811865476))
    # Cast intermediate back to the MXU compute dtype for the second matmul.
    h = h.astype(w2_ref.dtype)
    out = jnp.dot(h, w2_ref[...], preferred_element_type=jnp.float32) + b2_ref[...]
    o_ref[...] = out.astype(o_ref.dtype)


@functools.partial(jax.jit, static_argnames=("tm", "use_bf16"))
def mlp_pallas(x, w1, b1, w2, b2, *, tm=256, use_bf16=True):
    """x: (..., d_model) -> (..., d_out). Pallas kernel for matmul+GELU+matmul."""
    d_model = x.shape[-1]
    d_out = w2.shape[-1]
    lead_shape = x.shape[:-1]

    x2d = x.reshape(-1, d_model)
    n = x2d.shape[0]

    compute_dtype = jnp.bfloat16 if use_bf16 else x.dtype
    out_dtype = x.dtype
    compute_itemsize = jnp.dtype(compute_dtype).itemsize
    out_itemsize = jnp.dtype(out_dtype).itemsize

    # Lane-dense feature padding (multiples of 128). Zero padding is exact:
    # padded hidden columns see zero weight columns + zero bias -> gelu(0)=0,
    # and padded output columns / rows are sliced off below.
    dmp = max(128, _round_up(d_model, 128))
    dop = max(128, _round_up(d_out, 128))

    # Row tile: multiple of 16 (bf16 sublane packing) / 8 (f32); shrink for
    # tiny inputs or VMEM pressure; zero-pad the row tail so any N works.
    row_align = 16 if compute_dtype == jnp.bfloat16 else 8
    tm_eff = _pick_row_tile(tm, n, dmp, dop, compute_itemsize, out_itemsize, row_align)
    n_pad = _round_up(n, tm_eff)
    grid_rows = n_pad // tm_eff

    # Hoist all casts + padding into the wrapper (done once, not per tile).
    xp = jnp.pad(x2d.astype(compute_dtype), ((0, n_pad - n), (0, dmp - d_model)))
    w1p = jnp.pad(w1.astype(compute_dtype), ((0, dmp - d_model), (0, dmp - d_model)))
    w2p = jnp.pad(w2.astype(compute_dtype), ((0, dmp - d_model), (0, dop - d_out)))
    b1p = jnp.pad(b1.astype(jnp.float32), (0, dmp - d_model)).reshape(1, dmp)
    b2p = jnp.pad(b2.astype(jnp.float32), (0, dop - d_out)).reshape(1, dop)

    # Advisory cost estimate for the XLA scheduler.
    flops = 2 * n_pad * dmp * (dmp + dop)
    bytes_accessed = (
        xp.size * xp.dtype.itemsize
        + w1p.size * w1p.dtype.itemsize
        + w2p.size * w2p.dtype.itemsize
        + b1p.size * b1p.dtype.itemsize
        + b2p.size * b2p.dtype.itemsize
        + n_pad * dop * out_itemsize
    )
    cost = pl.CostEstimate(
        flops=int(flops),
        transcendentals=int(n_pad * dmp),  # one erf per hidden element
        bytes_accessed=int(bytes_accessed),
    )

    out_padded = pl.pallas_call(
        _mlp_kernel,
        out_shape=jax.ShapeDtypeStruct((n_pad, dop), out_dtype),
        grid_spec=pltpu.PrefetchScalarGridSpec(
            num_scalar_prefetch=0,
            grid=(grid_rows,),
            in_specs=[
                pl.BlockSpec((tm_eff, dmp), lambda i: (i, 0)),   # x row tile
                pl.BlockSpec((dmp, dmp), lambda i: (0, 0)),      # w1 (resident)
                pl.BlockSpec((1, dmp), lambda i: (0, 0)),        # b1
                pl.BlockSpec((dmp, dop), lambda i: (0, 0)),      # w2 (resident)
                pl.BlockSpec((1, dop), lambda i: (0, 0)),        # b2
            ],
            out_specs=pl.BlockSpec((tm_eff, dop), lambda i: (i, 0)),
        ),
        compiler_params=pltpu.CompilerParams(
            dimension_semantics=("parallel",),   # row axis shards across TCs on v7x
            vmem_limit_bytes=_vmem_limit_bytes(),
        ),
        cost_estimate=cost,
    )(xp, w1p, b1p, w2p, b2p)

    return out_padded[:n, :d_out].reshape(*lead_shape, d_out)


def _reference_mlp(x, w1, b1, w2, b2):
    h = jnp.dot(x, w1) + b1
    h = jax.nn.gelu(h, approximate=False)
    return jnp.dot(h, w2) + b2


if __name__ == "__main__":
    # Small shapes consistent with the module: x has trailing dim d_model.
    batch, seq, d_model, d_out = 2, 8, 32, 8

    key = jax.random.PRNGKey(0)
    kx, kw1, kb1, kw2, kb2 = jax.random.split(key, 5)

    x = jax.random.normal(kx, (batch, seq, d_model), dtype=jnp.float32)

    # Deterministic init mimicking torch.nn.Linear's uniform(-1/sqrt(fan_in), ...)
    lim1 = 1.0 / jnp.sqrt(d_model)
    w1 = jax.random.uniform(kw1, (d_model, d_model), jnp.float32, -lim1, lim1)
    b1 = jax.random.uniform(kb1, (d_model,), jnp.float32, -lim1, lim1)
    w2 = jax.random.uniform(kw2, (d_model, d_out), jnp.float32, -lim1, lim1)
    b2 = jax.random.uniform(kb2, (d_out,), jnp.float32, -lim1, lim1)

    ref = _reference_mlp(x, w1, b1, w2, b2)

    # Full-precision path: must match the torch-equivalent reference tightly.
    out_f32 = jax.block_until_ready(mlp_pallas(x, w1, b1, w2, b2, use_bf16=False))
    assert out_f32.shape == (batch, seq, d_out), out_f32.shape
    assert jnp.allclose(out_f32, ref, atol=1e-5, rtol=1e-5), (
        f"f32 max abs err {jnp.max(jnp.abs(out_f32 - ref))}"
    )

    # Fast path: bf16 operands on the MXU with f32 accumulation.
    out_bf16 = jax.block_until_ready(mlp_pallas(x, w1, b1, w2, b2, use_bf16=True))
    assert out_bf16.shape == (batch, seq, d_out), out_bf16.shape
    assert jnp.allclose(out_bf16, ref, atol=3e-2, rtol=3e-2), (
        f"bf16 max abs err {jnp.max(jnp.abs(out_bf16 - ref))}"
    )

    print("KERNEL_OK")
</pallas_src>

<mosaic_0001>
module attributes {stable_mosaic.version = 11 : i64} {
  func.func @_mlp_kernel(%arg0: i32, %arg1: memref<16x128xf32, #tpu.memory_space<vmem>>, %arg2: memref<128x128xf32, #tpu.memory_space<vmem>>, %arg3: memref<1x128xf32, #tpu.memory_space<vmem>>, %arg4: memref<128x128xf32, #tpu.memory_space<vmem>>, %arg5: memref<1x128xf32, #tpu.memory_space<vmem>>, %arg6: memref<16x128xf32, #tpu.memory_space<vmem>>) attributes {dimension_semantics = [#tpu.dimension_semantics<parallel>], iteration_bounds = array<i64: 1>, scalar_prefetch = 0 : i64, scratch_operands = 0 : i64, tpu.core_type = #tpu.core_type<tc>, window_params = [{transform_indices = @transform_0, window_bounds = array<i64: 16, 128>}, {pipeline_mode = #tpu.pipeline_mode<synchronous>, transform_indices = @transform_1, window_bounds = array<i64: 128, 128>}, {pipeline_mode = #tpu.pipeline_mode<synchronous>, transform_indices = @transform_2, window_bounds = array<i64: 1, 128>}, {pipeline_mode = #tpu.pipeline_mode<synchronous>, transform_indices = @transform_3, window_bounds = array<i64: 128, 128>}, {pipeline_mode = #tpu.pipeline_mode<synchronous>, transform_indices = @transform_4, window_bounds = array<i64: 1, 128>}, {transform_indices = @transform_5, window_bounds = array<i64: 16, 128>}]} {
    %c0 = arith.constant 0 : index
    %c0_0 = arith.constant 0 : index
    %0 = vector.load %arg1[%c0, %c0_0] : memref<16x128xf32, #tpu.memory_space<vmem>>, vector<16x128xf32>
    %c0_1 = arith.constant 0 : index
    %c0_2 = arith.constant 0 : index
    %1 = vector.load %arg2[%c0_1, %c0_2] : memref<128x128xf32, #tpu.memory_space<vmem>>, vector<128x128xf32>
    %cst = arith.constant dense<0.000000e+00> : vector<16x128xf32>
    %2 = tpu.matmul %0, %1, %cst {dimension_numbers = #tpu.dot_dimension_numbers<[1], [0], [0], [1], [0, 0, 1, 1], [], []>} : vector<16x128xf32>, vector<128x128xf32>, vector<16x128xf32> -> vector<16x128xf32>
    %c0_3 = arith.constant 0 : index
    %c0_4 = arith.constant 0 : index
    %3 = vector.load %arg3[%c0_3, %c0_4] : memref<1x128xf32, #tpu.memory_space<vmem>>, vector<1x128xf32>
    %4 = vector.broadcast %3 : vector<1x128xf32> to vector<16x128xf32>
    %5 = arith.addf %2, %4 : vector<16x128xf32>
    %cst_5 = arith.constant 5.000000e-01 : f32
    %6 = vector.broadcast %cst_5 : f32 to vector<16x128xf32>
    %7 = arith.mulf %6, %5 : vector<16x128xf32>
    %cst_6 = arith.constant 0.707106769 : f32
    %8 = vector.broadcast %cst_6 : f32 to vector<16x128xf32>
    %9 = arith.mulf %5, %8 : vector<16x128xf32>
    %10 = math.erf %9 : vector<16x128xf32>
    %cst_7 = arith.constant 1.000000e+00 : f32
    %11 = vector.broadcast %cst_7 : f32 to vector<16x128xf32>
    %12 = arith.addf %11, %10 : vector<16x128xf32>
    %13 = arith.mulf %7, %12 : vector<16x128xf32>
    %c0_8 = arith.constant 0 : index
    %c0_9 = arith.constant 0 : index
    %14 = vector.load %arg4[%c0_8, %c0_9] : memref<128x128xf32, #tpu.memory_space<vmem>>, vector<128x128xf32>
    %cst_10 = arith.constant dense<0.000000e+00> : vector<16x128xf32>
    %15 = tpu.matmul %13, %14, %cst_10 {dimension_numbers = #tpu.dot_dimension_numbers<[1], [0], [0], [1], [0, 0, 1, 1], [], []>} : vector<16x128xf32>, vector<128x128xf32>, vector<16x128xf32> -> vector<16x128xf32>
    %c0_11 = arith.constant 0 : index
    %c0_12 = arith.constant 0 : index
    %16 = vector.load %arg5[%c0_11, %c0_12] : memref<1x128xf32, #tpu.memory_space<vmem>>, vector<1x128xf32>
    %17 = vector.broadcast %16 : vector<1x128xf32> to vector<16x128xf32>
    %18 = arith.addf %15, %17 : vector<16x128xf32>
    %c0_13 = arith.constant 0 : index
    %c0_14 = arith.constant 0 : index
    %19 = vector.load %arg6[%c0_13, %c0_14] : memref<16x128xf32, #tpu.memory_space<vmem>>, vector<16x128xf32>
    tpu.vector_store %arg6[%c0_13, %c0_14], %18 {strides = array<i32>} : memref<16x128xf32, #tpu.memory_space<vmem>>, vector<16x128xf32>,
    return
  }
  func.func @transform_0(%arg0: i32) -> (i32, i32) {
    %c0_i32 = arith.constant 0 : i32
    %c0_i32_0 = arith.constant 0 : i32
    return %arg0, %c0_i32 : i32, i32
  }
  func.func @transform_1(%arg0: i32) -> (i32, i32) {
    %c0_i32 = arith.constant 0 : i32
    %c0_i32_0 = arith.constant 0 : i32
    %c0_i32_1 = arith.constant 0 : i32
    return %c0_i32, %c0_i32_0 : i32, i32
  }
  func.func @transform_2(%arg0: i32) -> (i32, i32) {
    %c0_i32 = arith.constant 0 : i32
    %c0_i32_0 = arith.constant 0 : i32
    %c0_i32_1 = arith.constant 0 : i32
    return %c0_i32, %c0_i32_0 : i32, i32
  }
  func.func @transform_3(%arg0: i32) -> (i32, i32) {
    %c0_i32 = arith.constant 0 : i32
    %c0_i32_0 = arith.constant 0 : i32
    %c0_i32_1 = arith.constant 0 : i32
    return %c0_i32, %c0_i32_0 : i32, i32
  }
  func.func @transform_4(%arg0: i32) -> (i32, i32) {
    %c0_i32 = arith.constant 0 : i32
    %c0_i32_0 = arith.constant 0 : i32
    %c0_i32_1 = arith.constant 0 : i32
    return %c0_i32, %c0_i32_0 : i32, i32
  }
  func.func @transform_5(%arg0: i32) -> (i32, i32) {
    %c0_i32 = arith.constant 0 : i32
    %c0_i32_0 = arith.constant 0 : i32
    return %arg0, %c0_i32 : i32, i32
  }
}

</mosaic_0001>

<bundles_post_ra>
// kernel: mlp_pallas.1
= control target key start
LH: loop header
LB: loop body
LE: loop exit
PB: predicated region body
PF: predicated region fallthrough
CT: control target
= control target key end

     0   :  { %s490_s1 = inlined_call_operand.vmem [shape: f32[128,128], index: 1, kind: input, shape index: {}]   ;;  %s491_s0 = inlined_call_operand.vmem [shape: f32[16,128], index: 0, kind: input, shape index: {}]   ;;  %s492_s3 = inlined_call_operand.vmem [shape: f32[128,128], index: 3, kind: input, shape index: {}]   ;;  %s493_s2 = inlined_call_operand.vmem [shape: f32[1,128], index: 2, kind: input, shape index: {}]   ;;  %s494_s4 = inlined_call_operand.vmem [shape: f32[1,128], index: 4, kind: input, shape index: {}]   ;;  %s495_s5 = inlined_call_operand.vmem [shape: f32[16,128], index: 5, kind: output, shape index: {}]  }
   0x1   :  { %v37_v0 = vld [vmem:[%s490_s1 + $0x78] sm:$0xff]  ;;  %v36_v1 = vld [vmem:[%s490_s1 + $0x70] sm:$0xff]  ;;  %v35_v2 = vld [vmem:[%s490_s1 + $0x68] sm:$0xff] }
   0x2   :  { %272 = vmatprep.subr.mxu0 %v37_v0  ;;  %v34_v3 = vld [vmem:[%s490_s1 + $0x60] sm:$0xff]  ;;  %v33_v5 = vld [vmem:[%s490_s1 + $0x58] sm:$0xff]  ;;  %v144_v7 = vld [vmem:[%s492_s3 + $0x70] sm:$0xff] }
   0x3   :  { %273 = vmatpush3.msra.mxu0 %v37_v0  ;;  %v20_v4 = vld [vmem:[%s491_s0] sm:$0xff]  ;;  %v145_v6 = vld [vmem:[%s492_s3 + $0x78] sm:$0xff]  ;;  %v32_v8 = vld [vmem:[%s490_s1 + $0x50] sm:$0xff] }
   0x4   :  { %274 = vmatprep.subr.mxu0 %v36_v1  ;;  %304 = vmatprep.mubr.f32.mxu0 %v20_v4  ;;  %v143_v9 = vld [vmem:[%s492_s3 + $0x68] sm:$0xff]  ;;  %v30_v11 = vld [vmem:[%s490_s1 + $0x40] sm:$0xff]  ;;  %v29_v12 = vld [vmem:[%s490_s1 + $0x38] sm:$0xff] }
   0x5   :  { %275 = vmatpush3.msra.mxu0 %v36_v1  ;;  %307 = vmatprep.subr.mxu1 %v145_v6  ;;  %v31_v10 = vld [vmem:[%s490_s1 + $0x48] sm:$0xff]  ;;  %v28_v13 = vld [vmem:[%s490_s1 + $0x30] sm:$0xff]  ;;  %v26_v15 = vld [vmem:[%s490_s1 + $0x20] sm:$0xff] }
   0x6   :  { %276 = vmatprep.subr.mxu0 %v35_v2  ;;  %308 = vmatpush3.msra.mxu1 %v145_v6  ;;  %v27_v14 = vld [vmem:[%s490_s1 + $0x28] sm:$0xff]  ;;  %v25_v16 = vld [vmem:[%s490_s1 + $0x18] sm:$0xff]  ;;  %v24_v17 = vld [vmem:[%s490_s1 + $0x10] sm:$0xff] }
   0x7   :  { %277 = vmatpush3.msra.mxu0 %v35_v2  ;;  %309 = vmatprep.subr.mxu1 %v144_v7  ;;  %v23_v18 = vld [vmem:[%s490_s1 + $0x8] sm:$0xff]  ;;  %v22_v19 = vld [vmem:[%s490_s1] sm:$0xff]  ;;  %v141_v22 = vld [vmem:[%s492_s3 + $0x58] sm:$0xff] }
   0x8   :  { %278 = vmatprep.subr.mxu0 %v34_v3  ;;  %310 = vmatpush3.msra.mxu1 %v144_v7  ;;  %v21_v20 = vld [vmem:[%s491_s0 + $0x8] sm:$0xff]  ;;  %v142_v21 = vld [vmem:[%s492_s3 + $0x60] sm:$0xff]  ;;  %v140_v23 = vld [vmem:[%s492_s3 + $0x50] sm:$0xff] }
   0x9   :  { %279 = vmatpush3.msra.mxu0 %v34_v3  ;;  %311 = vmatprep.subr.mxu1 %v143_v9  ;;  %v139_v24 = vld [vmem:[%s492_s3 + $0x48] sm:$0xff]  ;;  %v138_v25 = vld [vmem:[%s492_s3 + $0x40] sm:$0xff]  ;;  %v137_v26 = vld [vmem:[%s492_s3 + $0x38] sm:$0xff] }
   0xa   :  { %280 = vmatprep.subr.mxu0 %v33_v5  ;;  %312 = vmatpush3.msra.mxu1 %v143_v9  ;;  %v136_v27 = vld [vmem:[%s492_s3 + $0x30] sm:$0xff]  ;;  %v135_v28 = vld [vmem:[%s492_s3 + $0x28] sm:$0xff]  ;;  %v134_v29 = vld [vmem:[%s492_s3 + $0x20] sm:$0xff] }
   0xb   :  { %281 = vmatpush3.msra.mxu0 %v33_v5  ;;  %313 = vmatprep.subr.mxu1 %v142_v21  ;;  %v133_v30 = vld [vmem:[%s492_s3 + $0x18] sm:$0xff]  ;;  %v132_v31 = vld [vmem:[%s492_s3 + $0x10] sm:$0xff]  ;;  %v131_v32 = vld [vmem:[%s492_s3 + $0x8] sm:$0xff] }
   0xc   :  { %282 = vmatprep.subr.mxu0 %v32_v8  ;;  %314 = vmatpush3.msra.mxu1 %v142_v21  ;;  %v130_v33 = vld [vmem:[%s492_s3] sm:$0xff] }
   0xd   :  { %283 = vmatpush3.msra.mxu0 %v32_v8  ;;  %315 = vmatprep.subr.mxu1 %v141_v22  ;;  %v234_v34 = vld [vmem:[%s493_s2] ss:$0 sm:$0xff] }
   0xe   :  { %284 = vmatprep.subr.mxu0 %v31_v10  ;;  %316 = vmatpush3.msra.mxu1 %v141_v22  ;;  %v235_v49 = vld [vmem:[%s494_s4] ss:$0 sm:$0xff] }
   0xf   :  { %285 = vmatpush3.msra.mxu0 %v31_v10  ;;  %317 = vmatprep.subr.mxu1 %v140_v23 }
  0x10   :  { %286 = vmatprep.subr.mxu0 %v30_v11  ;;  %318 = vmatpush3.msra.mxu1 %v140_v23 }
  0x11   :  { %287 = vmatpush3.msra.mxu0 %v30_v11  ;;  %319 = vmatprep.subr.mxu1 %v139_v24 }
  0x12   :  { %288 = vmatprep.subr.mxu0 %v29_v12  ;;  %320 = vmatpush3.msra.mxu1 %v139_v24 }
  0x13   :  { %289 = vmatpush3.msra.mxu0 %v29_v12  ;;  %321 = vmatprep.subr.mxu1 %v138_v25 }
  0x14   :  { %290 = vmatprep.subr.mxu0 %v28_v13  ;;  %322 = vmatpush3.msra.mxu1 %v138_v25 }
  0x15   :  { %291 = vmatpush3.msra.mxu0 %v28_v13  ;;  %323 = vmatprep.subr.mxu1 %v137_v26 }
  0x16   :  { %292 = vmatprep.subr.mxu0 %v27_v14  ;;  %324 = vmatpush3.msra.mxu1 %v137_v26 }
  0x17   :  { %293 = vmatpush3.msra.mxu0 %v27_v14  ;;  %325 = vmatprep.subr.mxu1 %v136_v27 }
  0x18   :  { %294 = vmatprep.subr.mxu0 %v26_v15  ;;  %326 = vmatpush3.msra.mxu1 %v136_v27 }
  0x19   :  { %295 = vmatpush3.msra.mxu0 %v26_v15  ;;  %327 = vmatprep.subr.mxu1 %v135_v28 }
  0x1a   :  { %296 = vmatprep.subr.mxu0 %v25_v16  ;;  %328 = vmatpush3.msra.mxu1 %v135_v28 }
  0x1b   :  { %297 = vmatpush3.msra.mxu0 %v25_v16  ;;  %329 = vmatprep.subr.mxu1 %v134_v29 }
  0x1c   :  { %298 = vmatprep.subr.mxu0 %v24_v17  ;;  %330 = vmatpush3.msra.mxu1 %v134_v29 }
  0x1d   :  { %299 = vmatpush3.msra.mxu0 %v24_v17  ;;  %331 = vmatprep.subr.mxu1 %v133_v30 }
  0x1e   :  { %300 = vmatprep.subr.mxu0 %v23_v18  ;;  %332 = vmatpush3.msra.mxu1 %v133_v30 }
  0x1f   :  { %301 = vmatpush3.msra.mxu0 %v23_v18  ;;  %333 = vmatprep.subr.mxu1 %v132_v31 }
  0x20   :  { %302 = vmatprep.subr.mxu0 %v22_v19  ;;  %334 = vmatpush3.msra.mxu1 %v132_v31 }
  0x21   :  { %303 = vmatpush3.msra.mxu0 %v22_v19  ;;  %335 = vmatprep.subr.mxu1 %v131_v32 }
  0x22   :  { %305 = vmatmul.mubr.f32.vlgmr.msra.gmra.mxu0 %v21_v20  ;;  %336 = vmatpush3.msra.mxu1 %v131_v32 }
  0x23   :  { %337 = vmatprep.subr.mxu1 %v130_v33 }
  0x24   :  { %338 = vmatpush3.msra.mxu1 %v130_v33 }
  0xe2   :  { %v306_v35 = vpop.f32.mrf.mxu0 }
  0xe3   :  { %v117_v36 = vadd.f32 %v306_v35, %v234_v34 }
  0xe4   :  { %v111_v37 = vpop.f32.mrf.mxu0 }
  0xe5   :  { %v123_v38 = vmul.f32 0.70710677, %v117_v36  ;;  %v112_v39 = vadd.f32 %v234_v34, %v111_v37  ;;  %v121_v46 = vmul.f32 0.5, %v117_v36 }
  0xe7   :  { %342 = verf.f32 %v123_v38  ;;  %v122_v40 = vmul.f32 0.70710677, %v112_v39  ;;  %v120_v44 = vmul.f32 0.5, %v112_v39 }
  0xe9   :  { %344 = verf.f32 %v122_v40 }
  0xf4   :  { %v343_v41 = vpop.eup %342 }
  0xf5   :  { %v127_v43 = vadd.f32 1.0, %v343_v41 }
  0xf6   :  { %v345_v42 = vpop.eup %344 }
  0xf7   :  { %v126_v45 = vadd.f32 1.0, %v345_v42  ;;  %v129_v48 = vmul.f32 %v127_v43, %v121_v46 }
  0xf9   :  { %v128_v47 = vmul.f32 %v126_v45, %v120_v44 }
  0xfb   :  { %339 = vmatprep.mubr.f32.mxu1 %v128_v47 }
  0xfc   :  { %340 = vmatmul.mubr.f32.vlgmr.msra.gmra.mxu1 %v129_v48 }
 0x1bc   :  { %v341_v50 = vpop.f32.mrf.mxu1 }
 0x1bd   :  { %v225_v51 = vadd.f32 %v341_v50, %v235_v49 }
 0x1be   :  { %v219_v52 = vpop.f32.mrf.mxu1 }
 0x1bf   :  { %229 = vst [vmem:[%s495_s5 + $0x8] sm:$0xff] %v225_v51  ;;  %v220_v53 = vadd.f32 %v235_v49, %v219_v52 }
 0x1c1   :  { %228 = vst [vmem:[%s495_s5] sm:$0xff] %v220_v53 }

</bundles_post_ra>
